<compile_context>
chip_gen: v6e
topology: v6e:2x2x1
jax: 0.10.0
libtpu: 0.0.40
codegen_flags: <defaults>
</compile_context>

<pallas_src>
import math

import jax
import jax.numpy as jnp
from jax.experimental import pallas as pl
from jax.experimental.pallas import tpu as pltpu

_LANE = 128                         # vreg lane width  (last dim)
_SUBLANE = 8                        # vreg sublane width (second-to-last dim)
_VMEM_BUDGET = 30 * 1024 * 1024     # conservative scoped-VMEM budget for tiling
_VMEM_LIMIT = 32 * 1024 * 1024      # raises v5e's 16 MiB default; <= v7x physical


def _round_up(n, m):
    return ((n + m - 1) // m) * m


# --------------------------------------------------------------------------- #
# Kernel: one batch tile of   out = x @ W_fused + b_fused                      #
# --------------------------------------------------------------------------- #
def _mha_kernel(x_ref, w_ref, b_ref, o_ref):
    # x tile cast to bf16 in VMEM (bf16-native MXU), f32 accumulate, f32 store.
    x = x_ref[...].astype(jnp.bfloat16)
    o_ref[...] = (
        jnp.dot(x, w_ref[...], preferred_element_type=jnp.float32) + b_ref[...]
    )


# --------------------------------------------------------------------------- #
# Parameter handling (all one-time prep, nothing per forward call)             #
# --------------------------------------------------------------------------- #
def _xavier_uniform(key, shape):
    fan_out, fan_in = shape
    bound = math.sqrt(6.0 / (fan_in + fan_out))
    return jax.random.uniform(key, shape, jnp.float32, -bound, bound)


def init_params(key, input_dim, embed_dim, num_heads):
    """PyTorch-layout parameters: Linear weight is (out_features, in_features).

    The nn.Module zeroes its biases in _reset_parameters; small random biases
    are used here so the fused-bias path is actually exercised by the test
    (forward semantics are identical for any parameter values).
    """
    del num_heads
    k = jax.random.split(key, 4)
    return {
        "wqkv": _xavier_uniform(k[0], (3 * embed_dim, input_dim)),
        "bqkv": 0.01 * jax.random.normal(k[1], (3 * embed_dim,), jnp.float32),
        "wo":   _xavier_uniform(k[2], (embed_dim, embed_dim)),
        "bo":   0.01 * jax.random.normal(k[3], (embed_dim,), jnp.float32),
    }


def fuse_params(params, num_heads):
    """One-time prep: v-row extraction, Wv@Wo fusion, E-padding, bf16 cast.

    seq_len == 1  =>  attention output == v, so
        o = x @ Wv^T @ Wo^T + (bv @ Wo^T + bo).

    Returns:
      w_pad: (D_in, E_pad) bfloat16 fused weight (E zero-padded to 128 lanes)
      b_pad: (1, E_pad)    float32  fused bias
      E:     true embed_dim (for the output un-pad slice)
    """
    wqkv, bqkv = params["wqkv"], params["bqkv"]     # (3E, D_in), (3E,)
    wo, bo = params["wo"], params["bo"]             # (E, E),    (E,)
    E = wo.shape[0]
    hd = E // num_heads
    # v-rows of qkv_proj in head-concatenation order:
    # head h -> rows [3*h*hd + 2*hd, 3*h*hd + 3*hd)
    idx = jnp.concatenate(
        [jnp.arange(3 * h * hd + 2 * hd, 3 * h * hd + 3 * hd)
         for h in range(num_heads)]
    )
    wv = wqkv[idx]                                  # (E, D_in)
    bv = bqkv[idx]                                  # (E,)
    w_fused = wv.T @ wo.T                           # (D_in, E)  f32
    b_fused = bv @ wo.T + bo                        # (E,)       f32

    D_in = w_fused.shape[0]
    E_pad = _round_up(E, _LANE)
    w_pad = (jnp.zeros((D_in, E_pad), jnp.float32)
             .at[:, :E].set(w_fused)
             .astype(jnp.bfloat16))
    b_pad = jnp.zeros((1, E_pad), jnp.float32).at[0, :E].set(b_fused)
    return w_pad, b_pad, E


# --------------------------------------------------------------------------- #
# Wrapper                                                                      #
# --------------------------------------------------------------------------- #
def multihead_attention(x, w_pad, b_pad, embed_dim, *, block_b=1024):
    """o = MultiheadAttention(x) with mask=None, eval mode (seq_len == 1)."""
    B, D_in = x.shape
    Dw, E_pad = w_pad.shape
    assert Dw == D_in, "fused weight / input dim mismatch"

    # --- explicit VMEM budgeting for the batch-tile size -------------------
    # (weights counted at the default double-buffer worst case)
    w_bytes = 2 * D_in * E_pad * 2              # bf16 resident weight, x2 buf
    b_bytes = 2 * E_pad * 4                     # f32 bias, x2 buf
    per_row = 2 * D_in * 4 + 2 * E_pad * 4      # f32 x + f32 out double buffers
    avail = max(_VMEM_BUDGET - w_bytes - b_bytes, per_row * _SUBLANE)
    tm_cap = max(_SUBLANE,
                 min(block_b, (avail // per_row) // _SUBLANE * _SUBLANE))

    if B <= tm_cap:
        # Keep >= 2 grid steps where possible so v7x's 2 TensorCores both run.
        tm = min(_round_up(pl.cdiv(B, 2), _SUBLANE), _round_up(B, _SUBLANE))
    else:
        tm = tm_cap
    grid = (pl.cdiv(B, tm),)                    # partial last block handled by Pallas

    cost = pl.CostEstimate(
        flops=2 * B * D_in * E_pad,
        transcendentals=0,
        bytes_accessed=B * D_in * 4 + D_in * E_pad * 2 + E_pad * 4 + B * E_pad * 4,
    )

    out = pl.pallas_call(
        _mha_kernel,
        out_shape=jax.ShapeDtypeStruct((B, E_pad), jnp.float32),
        grid=grid,
        in_specs=[
            pl.BlockSpec((tm, D_in), lambda i: (i, 0)),     # x: batch-tiled, feature dim unpadded
            pl.BlockSpec((D_in, E_pad), lambda i: (0, 0)),  # fused W (bf16): resident
            pl.BlockSpec((1, E_pad), lambda i: (0, 0)),     # fused bias: resident
        ],
        out_specs=pl.BlockSpec((tm, E_pad), lambda i: (i, 0)),  # lane-dense stores
        compiler_params=pltpu.CompilerParams(
            dimension_semantics=("parallel",),
            vmem_limit_bytes=_VMEM_LIMIT,
        ),
        cost_estimate=cost,
    )(x, w_pad, b_pad)

    return out[:, :embed_dim]


# --------------------------------------------------------------------------- #
# Pure-JAX reference mirroring the PyTorch forward exactly                     #
# --------------------------------------------------------------------------- #
def multihead_attention_ref(x, params, num_heads):
    B, _ = x.shape
    E = params["wo"].shape[0]
    hd = E // num_heads
    qkv = x @ params["wqkv"].T + params["bqkv"]                       # (B, 3E)
    qkv = qkv.reshape(B, 1, num_heads, 3 * hd).transpose(0, 2, 1, 3)  # (B,H,1,3hd)
    q, k, v = jnp.split(qkv, 3, axis=-1)
    logits = jnp.matmul(q, jnp.swapaxes(k, -2, -1)) / math.sqrt(hd)
    attn = jax.nn.softmax(logits, axis=-1)
    values = jnp.matmul(attn, v).transpose(0, 2, 1, 3).reshape(B, E)
    return values @ params["wo"].T + params["bo"]


if __name__ == "__main__":
    B, D_IN, E, H = 8, 32, 32, 4       # batch, input_dim, embed_dim, num_heads
    key = jax.random.PRNGKey(0)
    kx, kp = jax.random.split(key)
    x = jax.random.normal(kx, (B, D_IN), jnp.float32)
    params = init_params(kp, D_IN, E, H)

    # Fusion / padding / bf16 cast hoisted out of the per-call path: done once.
    w_pad, b_pad, embed_dim = fuse_params(params, H)

    out = multihead_attention(x, w_pad, b_pad, embed_dim)
    out = jax.block_until_ready(out)

    ref = multihead_attention_ref(x, params, H)
    assert out.shape == (B, E)
    # bf16 weights/activations with f32 accumulation -> looser tolerance.
    err = float(jnp.max(jnp.abs(out - ref)))
    assert jnp.allclose(out, ref, atol=3e-2, rtol=3e-2), \
        f"mismatch vs JAX reference (max abs err {err})"
    print("KERNEL_OK")
</pallas_src>

<mosaic_0001>
module attributes {stable_mosaic.version = 11 : i64} {
  func.func @_mha_kernel(%arg0: i32, %arg1: memref<8x32xf32, #tpu.memory_space<vmem>>, %arg2: memref<32x128xbf16, #tpu.memory_space<vmem>>, %arg3: memref<1x128xf32, #tpu.memory_space<vmem>>, %arg4: memref<8x128xf32, #tpu.memory_space<vmem>>) attributes {dimension_semantics = [#tpu.dimension_semantics<parallel>], iteration_bounds = array<i64: 1>, scalar_prefetch = 0 : i64, scratch_operands = 0 : i64, tpu.core_type = #tpu.core_type<tc>, window_params = [{transform_indices = @transform_0, window_bounds = array<i64: 8, 32>}, {pipeline_mode = #tpu.pipeline_mode<synchronous>, transform_indices = @transform_1, window_bounds = array<i64: 32, 128>}, {pipeline_mode = #tpu.pipeline_mode<synchronous>, transform_indices = @transform_2, window_bounds = array<i64: 1, 128>}, {transform_indices = @transform_3, window_bounds = array<i64: 8, 128>}]} {
    %c0 = arith.constant 0 : index
    %c0_0 = arith.constant 0 : index
    %0 = vector.load %arg1[%c0, %c0_0] : memref<8x32xf32, #tpu.memory_space<vmem>>, vector<8x32xf32>
    %1 = arith.truncf %0 : vector<8x32xf32> to vector<8x32xbf16>
    %c0_1 = arith.constant 0 : index
    %c0_2 = arith.constant 0 : index
    %2 = vector.load %arg2[%c0_1, %c0_2] : memref<32x128xbf16, #tpu.memory_space<vmem>>, vector<32x128xbf16>
    %cst = arith.constant dense<0.000000e+00> : vector<8x128xf32>
    %3 = tpu.matmul %1, %2, %cst {dimension_numbers = #tpu.dot_dimension_numbers<[1], [0], [0], [1], [0, 0, 1, 1], [], []>} : vector<8x32xbf16>, vector<32x128xbf16>, vector<8x128xf32> -> vector<8x128xf32>
    %c0_3 = arith.constant 0 : index
    %c0_4 = arith.constant 0 : index
    %4 = vector.load %arg3[%c0_3, %c0_4] : memref<1x128xf32, #tpu.memory_space<vmem>>, vector<1x128xf32>
    %5 = vector.broadcast %4 : vector<1x128xf32> to vector<8x128xf32>
    %6 = arith.addf %3, %5 : vector<8x128xf32>
    %c0_5 = arith.constant 0 : index
    %c0_6 = arith.constant 0 : index
    %7 = vector.load %arg4[%c0_5, %c0_6] : memref<8x128xf32, #tpu.memory_space<vmem>>, vector<8x128xf32>
    tpu.vector_store %arg4[%c0_5, %c0_6], %6 {strides = array<i32>} : memref<8x128xf32, #tpu.memory_space<vmem>>, vector<8x128xf32>,
    return
  }
  func.func @transform_0(%arg0: i32) -> (i32, i32) {
    %c0_i32 = arith.constant 0 : i32
    %c0_i32_0 = arith.constant 0 : i32
    return %arg0, %c0_i32 : i32, i32
  }
  func.func @transform_1(%arg0: i32) -> (i32, i32) {
    %c0_i32 = arith.constant 0 : i32
    %c0_i32_0 = arith.constant 0 : i32
    %c0_i32_1 = arith.constant 0 : i32
    return %c0_i32, %c0_i32_0 : i32, i32
  }
  func.func @transform_2(%arg0: i32) -> (i32, i32) {
    %c0_i32 = arith.constant 0 : i32
    %c0_i32_0 = arith.constant 0 : i32
    %c0_i32_1 = arith.constant 0 : i32
    return %c0_i32, %c0_i32_0 : i32, i32
  }
  func.func @transform_3(%arg0: i32) -> (i32, i32) {
    %c0_i32 = arith.constant 0 : i32
    %c0_i32_0 = arith.constant 0 : i32
    return %arg0, %c0_i32 : i32, i32
  }
}

</mosaic_0001>

<bundles_post_ra>
// kernel: tpu_custom_call.1
= control target key start
LH: loop header
LB: loop body
LE: loop exit
PB: predicated region body
PF: predicated region fallthrough
CT: control target
= control target key end

     0   :  { %8 = vsyncpa [#allocation3], 0  ;;  %s257_s0 = inlined_call_operand.hbm [shape: f32[8,32], index: 0, kind: input, shape index: {}]   ;;  %s258_s1 = inlined_call_operand.hbm [shape: bf16[32,128], index: 1, kind: input, shape index: {}]   ;;  %s259_s2 = inlined_call_operand.vmem [shape: f32[1,128], index: 2, kind: input, shape index: {}]   ;;  %s260_s3 = inlined_call_operand.hbm [shape: f32[8,128], index: 3, kind: output, shape index: {}]  }
   0x1   :  { %9 = vsyncpa [#allocation6], 0 }
   0x2   :  { %10 = vsyncpa [#allocation4], 0  ;;  %s218_s12 = smov [#allocation2]   ;;  %s219_s14 = smov [#allocation5]  }
   0x3   :  { %s17_s13 = sshll.u32 %s218_s12, 4  ;;  %s26_s15 = sshll.u32 %s219_s14, 4  ;;  %s18_s13 = int_to_ptr.vmem [resolvable:$true] %s17_s13  ;;  %s27_s15 = int_to_ptr.vmem [resolvable:$true] %s26_s15 }
   0x4   :  { %s160_s16 = scalar_lea.vmem %s18_s13, 128  ;;  %p165_p1 = scmp.lt.s32.totalorder %s18_s13, %s18_s13 }
   0x5   :  { %p161_p0 = scmp.ne.s32.totalorder %s18_s13, %s160_s16  ;;  %p166_p2 = scmp.lt.s32.totalorder %s160_s16, %s160_s16 }
   0x7   :  { %p167_p3 = por %p166_p2, %p165_p1 }
   0x9   :  { %p168_p4 = pnand %p167_p3, %p161_p0 }
   0xb   :  { %171 = shalt.err (!%p168_p4)
}
   0xc   :  { %20 = dma.hbm_to_vmem [thread:$0]  %s257_s0, 128, %s18_s13, [#allocation3]  }
   0xd   :  { %s180_s19 = scalar_lea.vmem %s27_s15, 256  ;;  %p185_p6 = scmp.lt.s32.totalorder %s27_s15, %s27_s15 }
   0xe   :  { %p181_p5 = scmp.ne.s32.totalorder %s27_s15, %s180_s19  ;;  %p186_p7 = scmp.lt.s32.totalorder %s180_s19, %s180_s19 }
  0x10   :  { %p187_p8 = por %p186_p7, %p185_p6 }
  0x12   :  { %p188_p9 = pnand %p187_p8, %p181_p5 }
  0x14   :  { %191 = shalt.err (!%p188_p9)
}
  0x15   :  { %s220_s20 = smov 64   ;;  %s221_s21 = smov 4  }
  0x16   :  { %32 = dma.hbm_to_vmem [thread:$0]  %s258_s1, 256, %s27_s15, [#allocation6], %s220_s20, %s220_s20, %s221_s21  }
  0x17   :  { %212 = dma.done.wait [#allocation3], 128  }
  0x18   :  { %213 = vsyncadd [#allocation3], 4294967168 }
  0x19   :  { %214 = dma.done.wait [#allocation6], 256  }
  0x1a   :  { %215 = vsyncadd [#allocation6], 4294967040  ;;  %v222_v0 = vmov 0.0   ;;  %vm223_vm0 = vmmov 0   ;;  %v150_v1 = vld [vmem:[#allocation5 + $0x8] sm:$0xff]   ;;  %v151_v2 = vld [vmem:[#allocation5] sm:$0xff]  }
  0x1b   :  { %135 = vmatprep.subr.bf16.mxu0 %v222_v0  ;;  %139 = vmatprep.mubr.msk.bf16.mxu0 %vm223_vm0, %v222_v0  ;;  %v42_v3 = vld [vmem:[#allocation2] sm:$0xff]  ;;  %vm67_vm1 = vcmask 261120   ;;  %s224_s1 = smov [#allocation7]  }
  0x1c   :  { %136 = vmatpush3.bf16.msra.mxu0 %v150_v1  ;;  %v43_v4 = vpack.c.bf16 %v42_v3, %v42_v3  ;;  %v128_v5 = vld [vmem:[%s259_s2] ss:$0 sm:$0xff]  ;;  %s118_s25 = sshll.u32 %s224_s1, 4  ;;  %s119_s25 = int_to_ptr.vmem [resolvable:$true] %s118_s25 }
  0x1d   :  { %137 = vmatprep.subr.bf16.mxu0 %v222_v0  ;;  %s192_s26 = scalar_lea.vmem %s119_s25, 128  ;;  %p197_p11 = scmp.lt.s32.totalorder %s119_s25, %s119_s25 }
  0x1e   :  { %p193_p10 = scmp.ne.s32.totalorder %s119_s25, %s192_s26  ;;  %p198_p12 = scmp.lt.s32.totalorder %s192_s26, %s192_s26 }
  0x20   :  { %138 = vmatpush3.bf16.msra.mxu0 %v151_v2  ;;  %p199_p13 = por %p198_p12, %p197_p11 }
  0x22   :  { %p200_p0 = pnand %p199_p13, %p193_p10 }
  0x23   :  { %140 = vmatmul.mubr.msk.bf16.vlgmr.msra.gmra.mxu0 %vm67_vm1, %v43_v4 }
  0xe3   :  { %v105_v6 = vpop.f32.mrf.mxu0 }
  0xe4   :  { %v106_v7 = vadd.f32 %v128_v5, %v105_v6 }
  0xe5   :  { %v141_v8 = vpop.f32.mrf.mxu0 }
  0xe6   :  { %111 = vst [vmem:[#allocation7] sm:$0xff] %v106_v7 }
  0xe7   :  { %v108_v9 = vpop.f32.mrf.mxu0 }
  0xe8   :  { %203 = shalt.err (!%p200_p0)
}
  0xe9   :  { %121 = dma.vmem_to_hbm [thread:$0]  %s119_s25, 128, %s260_s3, [#allocation4]   ;;  %v142_v10 = vpop.f32.mrf.mxu0 }
  0xea   :  { %216 = dma.done.wait [#allocation4], 128  }
  0xeb   :  { %217 = vsyncadd [#allocation4], 4294967168 }
  0xec   :  { %125 = vsyncpa [#allocation3], 1 }
  0xed   :  { %126 = vsyncpa [#allocation6], 1 }
  0xee   :  { %127 = vsyncpa [#allocation4], 1 }

</bundles_post_ra>
